<compile_context>
chip_gen: v7x
topology: tpu7x:2x2x1
jax: 0.10.0
libtpu: 0.0.40
codegen_flags: <defaults>
</compile_context>

<pallas_src>
import numpy as np
import jax
import jax.numpy as jnp
from jax.experimental import pallas as pl
from jax.experimental.pallas import tpu as pltpu


def _round_up(x, m):
    return ((x + m - 1) // m) * m


def _make_kernel(n_layers, feat):
    """Fully-unrolled MLP body: (n_layers-1) Linear+ReLU layers followed by the
    fused (real|imag packed) complex head, on lane-dense (1, feat) rows."""

    def kernel(x_ref, w_ref, b_ref, out_ref):
        h = x_ref[...]                                    # (1, feat)
        for j in range(n_layers):
            w = w_ref[j * feat:(j + 1) * feat, :]         # (feat, feat), static slice
            b = b_ref[j:j + 1, :]                         # (1, feat)
            h = jnp.dot(h, w, preferred_element_type=jnp.float32) + b
            if j < n_layers - 1:                          # ReLU on hidden layers only
                h = jnp.maximum(h, 0.0)
        out_ref[...] = h                                  # (1, feat) lane-dense store

    return kernel


class KernelNNPallas:
    """JAX/Pallas equivalent of the PyTorch kernelNN(layers, ReLU)."""

    def __init__(self, layers, key):
        self.n_layers = len(layers) - 1
        assert self.n_layers >= 1
        dims = list(layers)
        self.d0 = dims[0]
        dims[0] = 2 * dims[0]            # toReal doubles the input feature dim
        self.dims = dims
        self.n_hidden = self.n_layers - 1
        self.out_dim = dims[-1]

        # ---- logical (PyTorch-equivalent) parameters, kept for the reference ----
        # PyTorch-style init: U(-1/sqrt(fan_in), 1/sqrt(fan_in)).
        hidden = []                       # [(W (in,out), b (out,))]
        for j in range(self.n_hidden):
            fan_in, fan_out = dims[j], dims[j + 1]
            bound = 1.0 / np.sqrt(fan_in)
            key, kw, kb = jax.random.split(key, 3)
            w = jax.random.uniform(kw, (fan_in, fan_out), jnp.float32, -bound, bound)
            b = jax.random.uniform(kb, (fan_out,), jnp.float32, -bound, bound)
            hidden.append((w, b))
        fan_in, fan_out = dims[-2], dims[-1]
        bound = 1.0 / np.sqrt(fan_in)
        key, k1, k2, k3, k4 = jax.random.split(key, 5)
        wr = jax.random.uniform(k1, (fan_in, fan_out), jnp.float32, -bound, bound)
        wi = jax.random.uniform(k2, (fan_in, fan_out), jnp.float32, -bound, bound)
        br = jax.random.uniform(k3, (fan_out,), jnp.float32, -bound, bound)
        bi = jax.random.uniform(k4, (fan_out,), jnp.float32, -bound, bound)
        self._full = (hidden, (wr, wi, br, bi))

        # ---- kernel-side packed parameters (2 lane-dense slabs) ----
        # Layer list for the kernel: hidden layers, then fused complex head.
        layer_mats = [(np.asarray(w), np.asarray(b)) for (w, b) in hidden]
        w_head = np.concatenate([np.asarray(wr), np.asarray(wi)], axis=1)  # (in, 2*out)
        b_head = np.concatenate([np.asarray(br), np.asarray(bi)])          # (2*out,)
        layer_mats.append((w_head, b_head))

        all_widths = dims + [2 * self.out_dim]
        self.feat = _round_up(max(all_widths), 128)       # uniform padded feature width
        F = self.feat

        w_slab = np.zeros((self.n_layers * F, F), np.float32)
        b_slab = np.zeros((_round_up(self.n_layers, 8), F), np.float32)
        for j, (w, b) in enumerate(layer_mats):
            in_d, out_d = w.shape
            w_slab[j * F:j * F + in_d, :out_d] = w
            b_slab[j, :out_d] = b
        self.w_slab = jnp.asarray(w_slab)
        self.b_slab = jnp.asarray(b_slab)

        # VMEM residency guard: slabs + (1,F) activations/output must fit well
        # inside the most conservative scoped-VMEM default (16 MiB on v5e).
        total_bytes = self.w_slab.size * 4 + self.b_slab.size * 4 + 4 * 2 * F
        assert total_bytes < 8 * 1024 * 1024, (
            "packed weights too large to keep resident in VMEM; add tiling "
            "or raise vmem_limit_bytes via pltpu.CompilerParams")

        pallas_fn = pl.pallas_call(
            _make_kernel(self.n_layers, F),
            out_shape=jax.ShapeDtypeStruct((1, F), jnp.float32),
            in_specs=[pl.BlockSpec(memory_space=pltpu.MemorySpace.VMEM)] * 3,
            out_specs=pl.BlockSpec(memory_space=pltpu.MemorySpace.VMEM),
        )

        d0, out_dim = self.d0, self.out_dim

        def _forward(x, w_slab, b_slab):
            xr = jnp.real(x).astype(jnp.float32)
            xi = jnp.imag(x).astype(jnp.float32)
            row = jnp.concatenate([xr, xi])               # toReal, fused by XLA
            row = jnp.pad(row, (0, F - 2 * d0)).reshape(1, F)
            packed = pallas_fn(row, w_slab, b_slab)       # (1, F) f32
            yr = packed[0, :out_dim]
            yi = packed[0, out_dim:2 * out_dim]
            return jax.lax.complex(yr, yi).astype(jnp.complex64)

        # Single end-to-end jit: one dispatch per call, all glue ops fused.
        self._forward = jax.jit(_forward)

    def __call__(self, x):
        # x: complex64 vector of shape [d0]
        return self._forward(x, self.w_slab, self.b_slab)

    def reference(self, x):
        """Pure-JAX reference (mirrors the PyTorch forward exactly)."""
        hidden, (wr, wi, br, bi) = self._full
        h = jnp.concatenate([jnp.real(x), jnp.imag(x)]).astype(jnp.float32)
        for w, b in hidden:
            h = jnp.maximum(h @ w + b, 0.0)
        yr = h @ wr + br
        yi = h @ wi + bi
        return (yr + 1j * yi).astype(jnp.complex64)


if __name__ == "__main__":
    key = jax.random.PRNGKey(0)
    key, kx_r, kx_i, kparams = jax.random.split(key, 4)

    # layers = [16, 32, 32, 8], nonlinearity = ReLU
    layers = [16, 32, 32, 8]
    model = KernelNNPallas(layers, kparams)

    # complex input vector of shape [d0]
    d0 = layers[0]
    x = (jax.random.normal(kx_r, (d0,), jnp.float32)
         + 1j * jax.random.normal(kx_i, (d0,), jnp.float32)).astype(jnp.complex64)

    y = jax.block_until_ready(model(x))
    y_ref = jax.block_until_ready(model.reference(x))

    assert y.shape == (layers[-1],) and y.dtype == jnp.complex64
    assert np.allclose(np.asarray(y), np.asarray(y_ref), rtol=1e-3, atol=1e-3)

    print("KERNEL_OK")
</pallas_src>

<mosaic_0001>
module attributes {stable_mosaic.version = 11 : i64} {
  func.func @kernel(%arg0: memref<1x128xf32, #tpu.memory_space<vmem>>, %arg1: memref<384x128xf32, #tpu.memory_space<vmem>>, %arg2: memref<8x128xf32, #tpu.memory_space<vmem>>, %arg3: memref<1x128xf32, #tpu.memory_space<vmem>>) attributes {dimension_semantics = [], scalar_prefetch = 0 : i64, scratch_operands = 0 : i64, tpu.core_type = #tpu.core_type<tc>} {
    %c0 = arith.constant 0 : index
    %c0_0 = arith.constant 0 : index
    %0 = vector.load %arg0[%c0, %c0_0] : memref<1x128xf32, #tpu.memory_space<vmem>>, vector<1x128xf32>
    %c0_1 = arith.constant 0 : index
    %c0_2 = arith.constant 0 : index
    %1 = vector.load %arg1[%c0_1, %c0_2] : memref<384x128xf32, #tpu.memory_space<vmem>>, vector<128x128xf32>
    %c0_3 = arith.constant 0 : index
    %c0_4 = arith.constant 0 : index
    %2 = vector.load %arg2[%c0_3, %c0_4] : memref<8x128xf32, #tpu.memory_space<vmem>>, vector<1x128xf32>
    %cst = arith.constant dense<0.000000e+00> : vector<1x128xf32>
    %3 = tpu.matmul %0, %1, %cst {dimension_numbers = #tpu.dot_dimension_numbers<[1], [0], [0], [1], [0, 0, 1, 1], [], []>} : vector<1x128xf32>, vector<128x128xf32>, vector<1x128xf32> -> vector<1x128xf32>
    %4 = arith.addf %3, %2 : vector<1x128xf32>
    %cst_5 = arith.constant 0.000000e+00 : f32
    %5 = vector.broadcast %cst_5 : f32 to vector<1x128xf32>
    %6 = arith.maximumf %4, %5 : vector<1x128xf32>
    %c128 = arith.constant 128 : index
    %c0_6 = arith.constant 0 : index
    %7 = vector.load %arg1[%c128, %c0_6] : memref<384x128xf32, #tpu.memory_space<vmem>>, vector<128x128xf32>
    %c1 = arith.constant 1 : index
    %c0_7 = arith.constant 0 : index
    %8 = vector.load %arg2[%c1, %c0_7] : memref<8x128xf32, #tpu.memory_space<vmem>>, vector<1x128xf32>
    %cst_8 = arith.constant dense<0.000000e+00> : vector<1x128xf32>
    %9 = tpu.matmul %6, %7, %cst_8 {dimension_numbers = #tpu.dot_dimension_numbers<[1], [0], [0], [1], [0, 0, 1, 1], [], []>} : vector<1x128xf32>, vector<128x128xf32>, vector<1x128xf32> -> vector<1x128xf32>
    %10 = arith.addf %9, %8 : vector<1x128xf32>
    %cst_9 = arith.constant 0.000000e+00 : f32
    %11 = vector.broadcast %cst_9 : f32 to vector<1x128xf32>
    %12 = arith.maximumf %10, %11 : vector<1x128xf32>
    %c256 = arith.constant 256 : index
    %c0_10 = arith.constant 0 : index
    %13 = vector.load %arg1[%c256, %c0_10] : memref<384x128xf32, #tpu.memory_space<vmem>>, vector<128x128xf32>
    %c2 = arith.constant 2 : index
    %c0_11 = arith.constant 0 : index
    %14 = vector.load %arg2[%c2, %c0_11] : memref<8x128xf32, #tpu.memory_space<vmem>>, vector<1x128xf32>
    %cst_12 = arith.constant dense<0.000000e+00> : vector<1x128xf32>
    %15 = tpu.matmul %12, %13, %cst_12 {dimension_numbers = #tpu.dot_dimension_numbers<[1], [0], [0], [1], [0, 0, 1, 1], [], []>} : vector<1x128xf32>, vector<128x128xf32>, vector<1x128xf32> -> vector<1x128xf32>
    %16 = arith.addf %15, %14 : vector<1x128xf32>
    %c0_13 = arith.constant 0 : index
    %c0_14 = arith.constant 0 : index
    %17 = vector.load %arg3[%c0_13, %c0_14] : memref<1x128xf32, #tpu.memory_space<vmem>>, vector<1x128xf32>
    tpu.vector_store %arg3[%c0_13, %c0_14], %16 {strides = array<i32>} : memref<1x128xf32, #tpu.memory_space<vmem>>, vector<1x128xf32>,
    return
  }
}

</mosaic_0001>

<bundles_post_ra>
// kernel: custom-call.1
= control target key start
LH: loop header
LB: loop body
LE: loop exit
PB: predicated region body
PF: predicated region fallthrough
CT: control target
= control target key end

     0   :  { %s59_s0 = inlined_call_operand.hbm [shape: c64[16], index: 0, kind: input, shape index: {}]   ;;  %s60_s1 = inlined_call_operand.vmem [shape: f32[16], index: 1, kind: output, shape index: {}]  }
   0x1   :  { %s2_s8 = scalar_lea.hbm %s59_s0, 16 }
   0x2   :  { %3 = vsyncpa [#allocation0], 0  ;;  %s4_s11 = sshll.u32 %s60_s1, 4  ;;  %s34_s14 = scalar_lea.hbm %s59_s0, 32  ;;  %s5_s11 = int_to_ptr.vmem [resolvable:$true] %s4_s11 }
   0x3   :  { %p11_p0 = scmp.ne.s32.totalorder %s2_s8, %s34_s14  ;;  %p13_p1 = scmp.lt.u32.totalorder %s2_s8, %s59_s0 }
   0x4   :  { %p14_p2 = scmp.lt.u32.totalorder %s34_s14, %s34_s14  ;;  %p16_p4 = scmp.lt.u32.totalorder %s34_s14, %s2_s8 }
   0x6   :  { %p15_p3 = por %p14_p2, %p13_p1 }
   0x8   :  { %p17_p5 = por %p16_p4, %p15_p3 }
   0xa   :  { %p18_p6 = pnand %p17_p5, %p11_p0 }
   0xc   :  { %21 = shalt.err (!%p18_p6)  }
   0xd   :  { %s22_s17 = scalar_lea.vmem %s5_s11, 16  ;;  %p27_p8 = scmp.lt.s32.totalorder %s5_s11, %s5_s11 }
   0xe   :  { %p23_p7 = scmp.ne.s32.totalorder %s5_s11, %s22_s17  ;;  %p28_p9 = scmp.lt.s32.totalorder %s22_s17, %s22_s17 }
  0x10   :  { %p29_p10 = por %p28_p9, %p27_p8 }
  0x12   :  { %p30_p11 = pnand %p29_p10, %p23_p7 }
  0x14   :  { %33 = shalt.err (!%p30_p11)  }
  0x15   :  { %7 = dma.hbm_to_vmem [thread:$0]  %s2_s8, 16, %s5_s11, [#allocation0] }
  0x16   :  { %35 = dma.done.wait [#allocation0], 16  }
  0x17   :  { %36 = vsyncadd [#allocation0], 4294967280 }
  0x18   :  { %9 = vsyncpa [#allocation0], 1 }

// kernel: custom-call
= control target key start
LH: loop header
LB: loop body
LE: loop exit
PB: predicated region body
PF: predicated region fallthrough
CT: control target
= control target key end

     0   :  { %2 = vsyncpa [#allocation0], 0  ;;  %s61_s0 = inlined_call_operand.hbm [shape: c64[16], index: 0, kind: input, shape index: {}]   ;;  %s62_s1 = inlined_call_operand.vmem [shape: f32[16], index: 1, kind: output, shape index: {}]  }
   0x1   :  { %s3_s8 = sshll.u32 %s62_s1, 4  ;;  %s9_s11 = scalar_lea.hbm %s61_s0, 16  ;;  %s4_s8 = int_to_ptr.vmem [resolvable:$true] %s3_s8 }
   0x2   :  { %p10_p0 = scmp.ne.s32.totalorder %s61_s0, %s9_s11  ;;  %s11_s16 = scalar_lea.hbm %s61_s0, 32 }
   0x3   :  { %p12_p1 = scmp.lt.u32.totalorder %s11_s16, %s9_s11  ;;  %p13_p2 = scmp.lt.u32.totalorder %s9_s11, %s61_s0 }
   0x5   :  { %p14_p3 = por %p13_p2, %p12_p1 }
   0x7   :  { %p15_p4 = pnand %p14_p3, %p10_p0 }
   0x9   :  { %18 = shalt.err (!%p15_p4)  }
   0xa   :  { %s19_s1 = scalar_lea.vmem %s4_s8, 16  ;;  %p24_p6 = scmp.lt.s32.totalorder %s4_s8, %s4_s8 }
   0xb   :  { %p20_p5 = scmp.ne.s32.totalorder %s4_s8, %s19_s1  ;;  %p25_p7 = scmp.lt.s32.totalorder %s19_s1, %s19_s1 }
   0xd   :  { %p26_p8 = por %p25_p7, %p24_p6 }
   0xf   :  { %p27_p9 = pnand %p26_p8, %p20_p5 }
  0x11   :  { %30 = shalt.err (!%p27_p9)  }
  0x12   :  { %6 = dma.hbm_to_vmem [thread:$0]  %s61_s0, 16, %s4_s8, [#allocation0] }
  0x13   :  { %31 = dma.done.wait [#allocation0], 16  }
  0x14   :  { %32 = vsyncadd [#allocation0], 4294967280 }
  0x15   :  { %8 = vsyncpa [#allocation0], 1 }

// kernel: custom-call.2
= control target key start
LH: loop header
LB: loop body
LE: loop exit
PB: predicated region body
PF: predicated region fallthrough
CT: control target
= control target key end

     0   :  { %s126_s0 = inlined_call_operand.vmem [shape: f32[8], index: 0, kind: input, shape index: {}]   ;;  %s127_s1 = inlined_call_operand.vmem [shape: f32[8], index: 1, kind: input, shape index: {}]   ;;  %s128_s2 = inlined_call_operand.hbm [shape: c64[8], index: 2, kind: output, shape index: {}]  }
   0x1   :  { %s87_s11 = scalar_lea.hbm %s128_s2, 16 }
   0x2   :  { %4 = vsyncpa [#allocation0], 0  ;;  %s5_s14 = sshll.u32 %s126_s0, 4  ;;  %s6_s14 = int_to_ptr.vmem [resolvable:$true] %s5_s14 }
   0x3   :  { %s18_s15 = scalar_lea.vmem %s6_s14, 16  ;;  %p23_p1 = scmp.lt.s32.totalorder %s6_s14, %s6_s14 }
   0x4   :  { %p19_p0 = scmp.ne.s32.totalorder %s6_s14, %s18_s15  ;;  %p24_p2 = scmp.lt.s32.totalorder %s18_s15, %s18_s15 }
   0x6   :  { %p25_p3 = por %p24_p2, %p23_p1 }
   0x8   :  { %p26_p4 = pnand %p25_p3, %p19_p0 }
   0xa   :  { %29 = shalt.err (!%p26_p4)  }
   0xb   :  { %p31_p5 = scmp.ne.s32.totalorder %s128_s2, %s87_s11  ;;  %s32_s0 = scalar_lea.hbm %s128_s2, 32 }
   0xc   :  { %p33_p6 = scmp.lt.u32.totalorder %s32_s0, %s87_s11  ;;  %p34_p7 = scmp.lt.u32.totalorder %s87_s11, %s128_s2 }
   0xe   :  { %p35_p8 = por %p34_p7, %p33_p6 }
  0x10   :  { %p36_p9 = pnand %p35_p8, %p31_p5 }
  0x12   :  { %39 = shalt.err (!%p36_p9)  }
  0x13   :  { %8 = dma.vmem_to_hbm [thread:$0]  %s6_s14, 16, %s128_s2, [#allocation0] }
  0x14   :  { %65 = dma.done.wait [#allocation0], 16  }
  0x15   :  { %66 = vsyncadd [#allocation0], 4294967280 }
  0x16   :  { %10 = vsyncpa [#allocation0], 1 }
  0x17   :  { %11 = vsyncpa [#allocation1], 0  ;;  %s12_s28 = sshll.u32 %s127_s1, 4  ;;  %s13_s28 = int_to_ptr.vmem [resolvable:$true] %s12_s28 }
  0x18   :  { %s40_s29 = scalar_lea.vmem %s13_s28, 16  ;;  %p45_p11 = scmp.lt.s32.totalorder %s13_s28, %s13_s28 }
  0x19   :  { %p41_p10 = scmp.ne.s32.totalorder %s13_s28, %s40_s29  ;;  %p46_p12 = scmp.lt.s32.totalorder %s40_s29, %s40_s29 }
  0x1b   :  { %p47_p13 = por %p46_p12, %p45_p11 }
  0x1d   :  { %p48_p0 = pnand %p47_p13, %p41_p10 }
  0x1f   :  { %51 = shalt.err (!%p48_p0)  }
  0x20   :  { %p53_p1 = scmp.ne.s32.totalorder %s87_s11, %s32_s0  ;;  %p56_p2 = scmp.lt.u32.totalorder %s32_s0, %s32_s0 }
  0x22   :  { %p57_p3 = por %p56_p2, %p34_p7 }
  0x24   :  { %p59_p4 = por %p57_p3, %p33_p6 }
  0x26   :  { %p60_p5 = pnand %p59_p4, %p53_p1 }
  0x28   :  { %63 = shalt.err (!%p60_p5)  }
  0x29   :  { %15 = dma.vmem_to_hbm [thread:$0]  %s13_s28, 16, %s87_s11, [#allocation1] }
  0x2a   :  { %67 = dma.done.wait [#allocation1], 16  }
  0x2b   :  { %68 = vsyncadd [#allocation1], 4294967280 }
  0x2c   :  { %17 = vsyncpa [#allocation1], 1 }

// kernel: _forward.1
= control target key start
LH: loop header
LB: loop body
LE: loop exit
PB: predicated region body
PF: predicated region fallthrough
CT: control target
= control target key end

     0   :  { %8 = vsyncpa [#allocation3], 0  ;;  %s556_s12 = smov [#allocation2]   ;;  %s639_s0 = inlined_call_operand.vmem [shape: f32[1,128], index: 0, kind: input, shape index: {}]   ;;  %s640_s1 = inlined_call_operand.hbm [shape: f32[384,128], index: 1, kind: input, shape index: {}]   ;;  %s641_s2 = inlined_call_operand.vmem [shape: f32[8,128], index: 2, kind: input, shape index: {}]   ;;  %s642_s3 = inlined_call_operand.vmem [shape: f32[1,128], index: 3, kind: output, shape index: {}]  }
   0x1   :  { %s16_s13 = sshll.u32 %s556_s12, 4  ;;  %s532_s16 = scalar_lea.hbm %s640_s1, 6144  ;;  %s17_s13 = int_to_ptr.vmem [resolvable:$true] %s16_s13 }
   0x2   :  { %p533_p0 = scmp.ne.s32.totalorder %s640_s1, %s532_s16  ;;  %p536_p1 = scmp.lt.u32.totalorder %s532_s16, %s640_s1 }
   0x4   :  { %p538_p2 = pnand %p536_p1, %p533_p0 }
   0x6   :  { %541 = shalt.err (!%p538_p2)
}
   0x7   :  { %s542_s21 = scalar_lea.vmem %s17_s13, 6144  ;;  %p547_p4 = scmp.lt.s32.totalorder %s17_s13, %s17_s13 }
   0x8   :  { %p543_p3 = scmp.ne.s32.totalorder %s17_s13, %s542_s21  ;;  %p548_p5 = scmp.lt.s32.totalorder %s542_s21, %s542_s21 }
   0xa   :  { %p549_p6 = por %p548_p5, %p547_p4 }
   0xc   :  { %p550_p7 = pnand %p549_p6, %p543_p3 }
   0xe   :  { %553 = shalt.err (!%p550_p7)
}
   0xf   :  { %s557_s22 = smov 128   ;;  %s558_s23 = smov 8  }
  0x10   :  { %22 = dma.hbm_to_vmem [thread:$0]  %s640_s1, 6144, %s17_s13, [#allocation3], %s557_s22, %s557_s22, %s558_s23  }
  0x11   :  { %554 = dma.done.wait [#allocation3], 6144  }
  0x12   :  { %555 = vsyncadd [#allocation3], 4294961152  ;;  %v559_v0 = vmov 0.0|0.0   ;;  %vm560_vm0 = vmmov 0   ;;  %v561_v1 = vmov 0.0   ;;  %v29_v2 = vld [vmem:[#allocation2] sm:$0xff] }
  0x13   :  { %454 = vmatprep.subr.bf16.mxu0 %v559_v0  ;;  %381 = vmatprep.mubr.msk.f32.mxu0 %vm560_vm0, %v561_v1  ;;  %v30_v3 = vld [vmem:[#allocation2 + $0x8] sm:$0xff]  ;;  %v31_v4 = vld [vmem:[#allocation2 + $0x10] sm:$0xff]  ;;  %v32_v6 = vld [vmem:[#allocation2 + $0x18] sm:$0xff] }
  0x14   :  { %478 = vmatprep.subr.bf16.mxu1 %v559_v0  ;;  %416 = vmatprep.mubr.msk.f32.mxu1 %vm560_vm0, %v561_v1  ;;  %v455_v5 = vpack.c.bf16 %v30_v3, %v29_v2  ;;  %v458_v7 = vpack.c.bf16 %v32_v6, %v31_v4  ;;  %v33_v8 = vld [vmem:[#allocation2 + $0x20] sm:$0xff]  ;;  %v34_v9 = vld [vmem:[#allocation2 + $0x28] sm:$0xff]  ;;  %v119_v12 = vld [vmem:[#allocation2 + $0x90] sm:$0xff] }
  0x15   :  { %v117_v10 = vld [vmem:[#allocation2 + $0x80] sm:$0xff]  ;;  %v118_v11 = vld [vmem:[#allocation2 + $0x88] sm:$0xff]  ;;  %v120_v13 = vld [vmem:[#allocation2 + $0x98] sm:$0xff]  ;;  %v461_v14 = vpack.c.bf16 %v34_v9, %v33_v8 }
  0x16   :  { %456 = vmatpush3.bf16.msra.mxu0 %v455_v5  ;;  %v479_v15 = vpack.c.bf16 %v118_v11, %v117_v10  ;;  %v35_v16 = vld [vmem:[#allocation2 + $0x30] sm:$0xff]  ;;  %v36_v17 = vld [vmem:[#allocation2 + $0x38] sm:$0xff]  ;;  %v482_v18 = vpack.c.bf16 %v120_v13, %v119_v12  ;;  %v121_v19 = vld [vmem:[#allocation2 + $0xa0] sm:$0xff] }
  0x17   :  { %457 = vmatprep.subr.bf16.mxu0 %v559_v0  ;;  %v122_v20 = vld [vmem:[#allocation2 + $0xa8] sm:$0xff]  ;;  %v464_v21 = vpack.c.bf16 %v36_v17, %v35_v16  ;;  %v37_v22 = vld [vmem:[#allocation2 + $0x40] sm:$0xff]  ;;  %v123_v25 = vld [vmem:[#allocation2 + $0xb0] sm:$0xff] }
  0x18   :  { %480 = vmatpush3.bf16.msra.mxu1 %v479_v15  ;;  %v38_v23 = vld [vmem:[#allocation2 + $0x48] sm:$0xff]  ;;  %v485_v24 = vpack.c.bf16 %v122_v20, %v121_v19  ;;  %v124_v26 = vld [vmem:[#allocation2 + $0xb8] sm:$0xff]  ;;  %v39_v28 = vld [vmem:[#allocation2 + $0x50] sm:$0xff] }
  0x19   :  { %481 = vmatprep.subr.bf16.mxu1 %v559_v0  ;;  %v467_v27 = vpack.c.bf16 %v38_v23, %v37_v22  ;;  %v40_v29 = vld [vmem:[#allocation2 + $0x58] sm:$0xff]  ;;  %v488_v30 = vpack.c.bf16 %v124_v26, %v123_v25  ;;  %v125_v31 = vld [vmem:[#allocation2 + $0xc0] sm:$0xff]  ;;  %v126_v32 = vld [vmem:[#allocation2 + $0xc8] sm:$0xff] }
  0x1a   :  { %459 = vmatpush3.bf16.msra.mxu0 %v458_v7  ;;  %v470_v33 = vpack.c.bf16 %v40_v29, %v39_v28  ;;  %v41_v34 = vld [vmem:[#allocation2 + $0x60] sm:$0xff]  ;;  %v42_v35 = vld [vmem:[#allocation2 + $0x68] sm:$0xff]  ;;  %v491_v36 = vpack.c.bf16 %v126_v32, %v125_v31  ;;  %v127_v37 = vld [vmem:[#allocation2 + $0xd0] sm:$0xff] }
  0x1b   :  { %460 = vmatprep.subr.bf16.mxu0 %v559_v0  ;;  %v128_v38 = vld [vmem:[#allocation2 + $0xd8] sm:$0xff]  ;;  %v473_v39 = vpack.c.bf16 %v42_v35, %v41_v34  ;;  %v43_v40 = vld [vmem:[#allocation2 + $0x70] sm:$0xff]  ;;  %v129_v43 = vld [vmem:[#allocation2 + $0xe0] sm:$0xff] }
  0x1c   :  { %483 = vmatpush3.bf16.msra.mxu1 %v482_v18  ;;  %v44_v41 = vld [vmem:[#allocation2 + $0x78] sm:$0xff]  ;;  %v494_v42 = vpack.c.bf16 %v128_v38, %v127_v37  ;;  %v130_v44 = vld [vmem:[#allocation2 + $0xe8] sm:$0xff]  ;;  %v28_v47 = vld [vmem:[%s639_s0] sm:$0x1] }
  0x1d   :  { %484 = vmatprep.subr.bf16.mxu1 %v559_v0  ;;  %v476_v45 = vpack.c.bf16 %v44_v41, %v43_v40  ;;  %v497_v46 = vpack.c.bf16 %v130_v44, %v129_v43  ;;  %v131_v48 = vld [vmem:[#allocation2 + $0xf0] sm:$0xff]  ;;  %v132_v49 = vld [vmem:[#allocation2 + $0xf8] sm:$0xff]  ;;  %v205_v51 = vld [vmem:[#allocation2 + $0x100] sm:$0xff] }
  0x1e   :  { %462 = vmatpush3.bf16.msra.mxu0 %v461_v14  ;;  %v500_v50 = vpack.c.bf16 %v132_v49, %v131_v48  ;;  %v206_v52 = vld [vmem:[#allocation2 + $0x108] sm:$0xff]  ;;  %v207_v53 = vld [vmem:[#allocation2 + $0x110] sm:$0xff]  ;;  %v208_v55 = vld [vmem:[#allocation2 + $0x118] sm:$0xff] }
  0x1f   :  { %463 = vmatprep.subr.bf16.mxu0 %v559_v0  ;;  %v503_v54 = vpack.c.bf16 %v206_v52, %v205_v51  ;;  %v506_v56 = vpack.c.bf16 %v208_v55, %v207_v53  ;;  %v209_v57 = vld [vmem:[#allocation2 + $0x120] sm:$0xff]  ;;  %v210_v58 = vld [vmem:[#allocation2 + $0x128] sm:$0xff]  ;;  %v211_v60 = vld [vmem:[#allocation2 + $0x130] sm:$0xff] }
  0x20   :  { %486 = vmatpush3.bf16.msra.mxu1 %v485_v24  ;;  %v509_v59 = vpack.c.bf16 %v210_v58, %v209_v57  ;;  %v212_v61 = vld [vmem:[#allocation2 + $0x138] sm:$0xff]  ;;  %v213_v63 = vld [vmem:[#allocation2 + $0x140] sm:$0xff]  ;;  %v215_v3 = vld [vmem:[#allocation2 + $0x150] sm:$0xff] }
  0x21   :  { %487 = vmatprep.subr.bf16.mxu1 %v559_v0  ;;  %v512_v62 = vpack.c.bf16 %v212_v61, %v211_v60  ;;  %v216_v4 = vld [vmem:[#allocation2 + $0x158] sm:$0xff]  ;;  %v217_v6 = vld [vmem:[#allocation2 + $0x160] sm:$0xff]  ;;  %v218_v7 = vld [vmem:[#allocation2 + $0x168] sm:$0xff] }
  0x22   :  { %465 = vmatpush3.bf16.msra.mxu0 %v464_v21  ;;  %v518_v5 = vpack.c.bf16 %v216_v4, %v215_v3  ;;  %v521_v8 = vpack.c.bf16 %v218_v7, %v217_v6  ;;  %v45_v9 = vld [vmem:[%s641_s2] sm:$0x1]  ;;  %v219_v14 = vld [vmem:[#allocation2 + $0x170] sm:$0xff]  ;;  %v220_v15 = vld [vmem:[#allocation2 + $0x178] sm:$0xff] }
  0x23   :  { %466 = vmatprep.subr.bf16.mxu0 %v559_v0  ;;  %v524_v16 = vpack.c.bf16 %v220_v15, %v219_v14  ;;  %v133_v17 = vld [vmem:[%s641_s2 + $0x1] sm:$0x1]  ;;  %v221_v21 = vld [vmem:[%s641_s2 + $0x2] sm:$0x1] }
  0x24   :  { %489 = vmatpush3.bf16.msra.mxu1 %v488_v30 }
  0x25   :  { %490 = vmatprep.subr.bf16.mxu1 %v559_v0 }
  0x26   :  { %468 = vmatpush3.bf16.msra.mxu0 %v467_v27 }
  0x27   :  { %469 = vmatprep.subr.bf16.mxu0 %v559_v0 }
  0x28   :  { %492 = vmatpush3.bf16.msra.mxu1 %v491_v36 }
  0x29   :  { %493 = vmatprep.subr.bf16.mxu1 %v559_v0 }
  0x2a   :  { %471 = vmatpush3.bf16.msra.mxu0 %v470_v33 }
  0x2b   :  { %472 = vmatprep.subr.bf16.mxu0 %v559_v0 }
  0x2c   :  { %495 = vmatpush3.bf16.msra.mxu1 %v494_v42 }
  0x2d   :  { %496 = vmatprep.subr.bf16.mxu1 %v559_v0 }
  0x2e   :  { %474 = vmatpush3.bf16.msra.mxu0 %v473_v39 }
  0x2f   :  { %475 = vmatprep.subr.bf16.mxu0 %v559_v0 }
  0x30   :  { %498 = vmatpush3.bf16.msra.mxu1 %v497_v46 }
  0x31   :  { %499 = vmatprep.subr.bf16.mxu1 %v559_v0 }
  0x32   :  { %477 = vmatpush3.bf16.msra.mxu0 %v476_v45 }
  0x33   :  { %502 = vmatprep.subr.bf16.mxu0 %v559_v0 }
  0x34   :  { %501 = vmatpush3.bf16.msra.mxu1 %v500_v50 }
  0x35   :  { %382 = vmatmul.mubr.f32.vlgmr.msra.gmra.mrb[0].mxu0 %v28_v47 }
  0x36   :  { %451 = vmatprep.mubr.msk.f32.mxu0 %vm560_vm0, %v561_v1  ;;  %504 = vmatpush3.bf16.msra.mxu0 %v503_v54  ;;  %v214_v1 = vld [vmem:[#allocation2 + $0x148] sm:$0xff] }
  0x37   :  { %505 = vmatprep.subr.bf16.mxu0 %v559_v0  ;;  %v515_v2 = vpack.c.bf16 %v214_v1, %v213_v63 }
  0x3a   :  { %507 = vmatpush3.bf16.msra.mxu0 %v506_v56 }
  0x3b   :  { %508 = vmatprep.subr.bf16.mxu0 %v559_v0 }
  0x3e   :  { %510 = vmatpush3.bf16.msra.mxu0 %v509_v59 }
  0x3f   :  { %511 = vmatprep.subr.bf16.mxu0 %v559_v0 }
  0x42   :  { %513 = vmatpush3.bf16.msra.mxu0 %v512_v62 }
  0x43   :  { %514 = vmatprep.subr.bf16.mxu0 %v559_v0 }
  0x46   :  { %516 = vmatpush3.bf16.msra.mxu0 %v515_v2 }
  0x47   :  { %517 = vmatprep.subr.bf16.mxu0 %v559_v0 }
  0x4a   :  { %519 = vmatpush3.bf16.msra.mxu0 %v518_v5 }
  0x4b   :  { %520 = vmatprep.subr.bf16.mxu0 %v559_v0 }
  0x4e   :  { %522 = vmatpush3.bf16.msra.mxu0 %v521_v8 }
  0x4f   :  { %523 = vmatprep.subr.bf16.mxu0 %v559_v0 }
  0x52   :  { %525 = vmatpush3.bf16.msra.mxu0 %v524_v16 }
 0x108   :  { %v112_v10 = vpop.f32.mrb[0].mxu0 }
 0x109   :  { %v113_v11 = vadd.f32 %v112_v10, %v45_v9  ;;  %v383_v12 = vpop.f32.mrb[1].mxu0 }
 0x10b   :  { %v116_v13 = vmax.f32 %v113_v11, 0.0 }
 0x10d   :  { %417 = vmatmul.mubr.f32.vlgmr.msra.gmra.mrb[0].mxu1 %v116_v13 }
 0x1e0   :  { %v200_v18 = vpop.f32.mrb[0].mxu1 }
 0x1e1   :  { %v201_v19 = vadd.f32 %v200_v18, %v133_v17  ;;  %v418_v0 = vpop.f32.mrb[1].mxu1 }
 0x1e3   :  { %v204_v20 = vmax.f32 %v201_v19, 0.0 }
 0x1e5   :  { %452 = vmatmul.mubr.f32.vlgmr.msra.gmra.mrb[2].mxu0 %v204_v20 }
 0x2b8   :  { %v288_v22 = vpop.f32.mrb[2].mxu0 }
 0x2b9   :  { %v289_v23 = vadd.f32 %v288_v22, %v221_v21  ;;  %v453_v24 = vpop.f32.mrb[3].mxu0 }
 0x2bb   :  { %292 = vst [vmem:[%s642_s3] sm:$0x1] %v289_v23 }
 0x2bc   :  { %297 = vsyncpa [#allocation3], 1 }

</bundles_post_ra>
